<compile_context>
chip_gen: v7x
topology: tpu7x:2x2x1
jax: 0.10.0
libtpu: 0.0.40
codegen_flags: <defaults>
</compile_context>

<pallas_src>
import jax
import jax.numpy as jnp
from jax.experimental import pallas as pl
from jax.experimental.pallas import tpu as pltpu

LN_EPS = 1e-5  # torch.nn.LayerNorm default


def _round_up(x, m):
    return ((x + m - 1) // m) * m


def decoder_kernel(x_ref, w_ref, b_ref, o_ref, xn_ref):
    """One (row-tile i, channel-tile j) step of fused LayerNorm + Linear.

    The LayerNorm affine is pre-folded into w/b, so the kernel computes
        o = ((x - mean) * rsqrt(var + eps)) @ w + b
    x_ref:  (tm, dim_c)  input rows; block index depends only on i -> resident across j
    w_ref:  (dim_c, tn)  folded weight tile
    b_ref:  (1, tn)      folded bias tile
    o_ref:  (tm, tn)     output tile
    xn_ref: (tm, dim_c)  VMEM scratch caching the normalized rows across the j sweep
    """
    @pl.when(pl.program_id(1) == 0)
    def _():
        # One-pass LN statistics in f32 (biased variance, matching torch.nn.LayerNorm).
        x = x_ref[...].astype(jnp.float32)
        mean = jnp.mean(x, axis=-1, keepdims=True)
        var = jnp.maximum(jnp.mean(x * x, axis=-1, keepdims=True) - mean * mean, 0.0)
        xn_ref[...] = ((x - mean) * jax.lax.rsqrt(var + LN_EPS)).astype(xn_ref.dtype)

    y = jnp.dot(xn_ref[...], w_ref[...], preferred_element_type=jnp.float32)
    o_ref[...] = (y + b_ref[...].astype(jnp.float32)).astype(o_ref.dtype)


def _vmem_capacity_bytes():
    try:
        return int(pltpu.get_tpu_info().vmem_capacity_bytes)
    except Exception:
        return 64 << 20  # conservative fallback: v7x per-TensorCore VMEM


def _choose_tiles(n_rows, dim_c, channel_p, x_item, w_item, o_item):
    vmem_cap = _vmem_capacity_bytes()
    # v7x is the only generation with <= 64 MiB per-TensorCore VMEM (and 2 TCs/chip).
    two_tensorcores = vmem_cap <= (64 << 20)
    budget = int(vmem_cap * 0.7)

    # Channel tile: bounded so the weight/out tiles stay small regardless of channel;
    # 128-lane multiple (512 target also a multiple of the 256-wide v6e/v7x MXU).
    tn = min(channel_p, 512)
    tn = max(128, (tn // 128) * 128)

    # Channel-indexed operands (weight, bias); assume worst-case double buffering.
    resident = 2 * (dim_c * tn + tn) * w_item

    # Per row of the tile: x (double-buffered) + out (double-buffered) + xn scratch
    # + headroom for f32 intermediates.
    per_row = 2 * dim_c * x_item + 2 * tn * o_item + dim_c * w_item + 8 * dim_c

    tm = (budget - resident) // per_row if budget > resident else 8
    tm = int(max(8, min(1024, tm)))
    tm = min(tm, _round_up(n_rows, 8))  # never bigger than the problem
    if two_tensorcores:
        # Keep >= 2 row tiles so the "parallel" axis can shard across both TensorCores.
        tm = min(tm, max(8, _round_up(pl.cdiv(n_rows, 2), 8)))
    tm = max(8, (tm // 8) * 8)

    est = (resident + 2 * tm * dim_c * x_item + 2 * tm * tn * o_item
           + tm * dim_c * w_item + (4 << 20))
    vmem_limit = int(min(int(vmem_cap * 0.8), max(32 << 20, est)))
    return tm, tn, vmem_limit


def decoder_unshare(x, gamma, beta, weight, bias, *, tm=None, tn=None):
    """x: (batch, seq, dim_c); weight: (channel, dim_c) [nn.Linear layout]; bias: (channel,)."""
    batch, seq, dim_c = x.shape
    channel = weight.shape[0]
    n_rows = batch * seq
    out_dtype = x.dtype
    x_item = jnp.dtype(x.dtype).itemsize
    o_item = jnp.dtype(out_dtype).itemsize

    # Fold the LayerNorm affine into the linear layer (one-time f32 precompute):
    #   ((x-m)*r*gamma + beta) @ W.T + b == ((x-m)*r) @ (gamma[:,None]*W.T) + (beta@W.T + b)
    w_f32 = weight.astype(jnp.float32)
    w_folded = (gamma.astype(jnp.float32)[:, None] * w_f32.T).astype(weight.dtype)  # (dim_c, channel)
    b_folded = beta.astype(jnp.float32) @ w_f32.T + bias.astype(jnp.float32)        # (channel,) f32

    # Lane-dense output: pad the channel axis to a multiple of 128 only when misaligned.
    channel_p = _round_up(channel, 128)
    if channel_p != channel:
        w_folded = jnp.pad(w_folded, ((0, 0), (0, channel_p - channel)))
        b_folded = jnp.pad(b_folded, (0, channel_p - channel))
    b2d = b_folded.reshape(1, channel_p)
    w_item = jnp.dtype(w_folded.dtype).itemsize

    auto_tm, auto_tn, vmem_limit = _choose_tiles(n_rows, dim_c, channel_p, x_item, w_item, o_item)
    tm = auto_tm if tm is None else max(8, (int(tm) // 8) * 8)
    tn = auto_tn if tn is None else max(128, (int(tn) // 128) * 128)
    tn = min(tn, channel_p)

    grid = (pl.cdiv(n_rows, tm), pl.cdiv(channel_p, tn))
    x2d = x.reshape(n_rows, dim_c)  # no row padding: Pallas masks the ragged last block

    cost = pl.CostEstimate(
        flops=int(2 * n_rows * dim_c * channel_p + 8 * n_rows * dim_c),
        transcendentals=int(n_rows),
        bytes_accessed=int(n_rows * dim_c * x_item + dim_c * channel_p * w_item
                           + channel_p * 4 + n_rows * channel_p * o_item),
    )

    def build(single_buffer_weights):
        const_kw = (dict(pipeline_mode=pl.Buffered(buffer_count=1))
                    if single_buffer_weights else {})
        return pl.pallas_call(
            decoder_kernel,
            out_shape=jax.ShapeDtypeStruct((n_rows, channel_p), out_dtype),
            grid_spec=pltpu.PrefetchScalarGridSpec(
                num_scalar_prefetch=0,
                grid=grid,
                in_specs=[
                    # x block depends only on i -> stays resident while j sweeps channels.
                    pl.BlockSpec((tm, dim_c), lambda i, j: (i, 0)),
                    pl.BlockSpec((dim_c, tn), lambda i, j: (0, j), **const_kw),
                    pl.BlockSpec((1, tn), lambda i, j: (0, j), **const_kw),
                ],
                out_specs=pl.BlockSpec((tm, tn), lambda i, j: (i, j)),
                scratch_shapes=[pltpu.VMEM((tm, dim_c), w_folded.dtype)],
            ),
            compiler_params=pltpu.CompilerParams(
                # Row tiles are independent (megacore); channel axis carries xn scratch.
                dimension_semantics=("parallel", "arbitrary"),
                vmem_limit_bytes=vmem_limit,
            ),
            cost_estimate=cost,
        )

    def finish(out2d):
        if channel_p != channel:
            out2d = out2d[:, :channel]
        return out2d.reshape(batch, seq, channel)

    # Single-buffer weight/bias only when they are grid-invariant (one channel tile).
    # If this JAX build rejects Buffered(1), fall back to default double-buffering;
    # a genuine unrelated error reproduces and is raised by the fallback call.
    if grid[1] == 1:
        try:
            return finish(build(True)(x2d, w_folded, b2d))
        except Exception:
            pass
    return finish(build(False)(x2d, w_folded, b2d))


def _reference(x, gamma, beta, weight, bias):
    xf = x.astype(jnp.float32)
    mean = jnp.mean(xf, axis=-1, keepdims=True)
    var = jnp.mean((xf - mean) ** 2, axis=-1, keepdims=True)
    xn = (xf - mean) / jnp.sqrt(var + LN_EPS)
    xn = xn * gamma + beta
    return xn @ weight.T.astype(jnp.float32) + bias


if __name__ == "__main__":
    batch, seq, dim_c, channel = 2, 8, 32, 16

    key = jax.random.PRNGKey(0)
    kx, kw, kb, kg, kbt, kx2 = jax.random.split(key, 6)

    x = jax.random.normal(kx, (batch, seq, dim_c), dtype=jnp.float32)

    # Parameters with the module's shapes; non-trivial gamma/beta exercise the affine fold.
    gamma = 1.0 + 0.1 * jax.random.normal(kg, (dim_c,), dtype=jnp.float32)
    beta = 0.1 * jax.random.normal(kbt, (dim_c,), dtype=jnp.float32)
    bound = 1.0 / (dim_c ** 0.5)
    weight = jax.random.uniform(kw, (channel, dim_c), jnp.float32, -bound, bound)
    bias = jax.random.uniform(kb, (channel,), jnp.float32, -bound, bound)

    out = jax.block_until_ready(decoder_unshare(x, gamma, beta, weight, bias))
    ref = _reference(x, gamma, beta, weight, bias)
    assert out.shape == (batch, seq, channel)
    assert jnp.allclose(out, ref, atol=3e-5, rtol=1e-5), float(jnp.max(jnp.abs(out - ref)))

    # Ragged row count (batch*seq not a multiple of the row tile) -> masked last block.
    x_odd = jax.random.normal(kx2, (batch, 7, dim_c), dtype=jnp.float32)
    out_odd = jax.block_until_ready(decoder_unshare(x_odd, gamma, beta, weight, bias))
    ref_odd = _reference(x_odd, gamma, beta, weight, bias)
    assert out_odd.shape == (batch, 7, channel)
    assert jnp.allclose(out_odd, ref_odd, atol=3e-5, rtol=1e-5)

    print("KERNEL_OK")
</pallas_src>

<mosaic_0001>
module attributes {stable_mosaic.version = 11 : i64} {
  func.func @decoder_kernel(%arg0: i32, %arg1: i32, %arg2: memref<8x32xf32, #tpu.memory_space<vmem>>, %arg3: memref<32x128xf32, #tpu.memory_space<vmem>>, %arg4: memref<1x128xf32, #tpu.memory_space<vmem>>, %arg5: memref<8x128xf32, #tpu.memory_space<vmem>>, %arg6: memref<8x32xf32, #tpu.memory_space<vmem>>) attributes {dimension_semantics = [#tpu.dimension_semantics<parallel>, #tpu.dimension_semantics<arbitrary>], iteration_bounds = array<i64: 2, 1>, scalar_prefetch = 0 : i64, scratch_operands = 1 : i64, tpu.core_type = #tpu.core_type<tc>, window_params = [{transform_indices = @transform_0, window_bounds = array<i64: 8, 32>}, {pipeline_mode = #tpu.pipeline_mode<synchronous>, transform_indices = @transform_1, window_bounds = array<i64: 32, 128>}, {pipeline_mode = #tpu.pipeline_mode<synchronous>, transform_indices = @transform_2, window_bounds = array<i64: 1, 128>}, {transform_indices = @transform_3, window_bounds = array<i64: 8, 128>}]} {
    %c0_i32 = arith.constant 0 : i32
    %0 = arith.cmpi eq, %arg1, %c0_i32 : i32
    %1 = arith.extui %0 : i1 to i32
    %c0_i32_0 = arith.constant 0 : i32
    %2 = arith.cmpi ne, %1, %c0_i32_0 : i32
    scf.if %2 {
      %c0_8 = arith.constant 0 : index
      %c0_9 = arith.constant 0 : index
      %10 = vector.load %arg2[%c0_8, %c0_9] : memref<8x32xf32, #tpu.memory_space<vmem>>, vector<8x32xf32>
      %cst_10 = arith.constant dense<0.000000e+00> : vector<8xf32>
      %11 = vector.multi_reduction <add>, %10, %cst_10 [1] : vector<8x32xf32> to vector<8xf32>
      %12 = vector.shape_cast %11 : vector<8xf32> to vector<8x1xf32>
      %cst_11 = arith.constant 3.200000e+01 : f32
      %13 = vector.broadcast %cst_11 : f32 to vector<8x1xf32>
      %14 = arith.divf %12, %13 : vector<8x1xf32>
      %15 = arith.mulf %10, %10 : vector<8x32xf32>
      %cst_12 = arith.constant dense<0.000000e+00> : vector<8xf32>
      %16 = vector.multi_reduction <add>, %15, %cst_12 [1] : vector<8x32xf32> to vector<8xf32>
      %17 = vector.shape_cast %16 : vector<8xf32> to vector<8x1xf32>
      %cst_13 = arith.constant 3.200000e+01 : f32
      %18 = vector.broadcast %cst_13 : f32 to vector<8x1xf32>
      %19 = arith.divf %17, %18 : vector<8x1xf32>
      %20 = arith.mulf %14, %14 : vector<8x1xf32>
      %21 = arith.subf %19, %20 : vector<8x1xf32>
      %cst_14 = arith.constant 0.000000e+00 : f32
      %22 = vector.broadcast %cst_14 : f32 to vector<8x1xf32>
      %23 = arith.maximumf %21, %22 : vector<8x1xf32>
      %24 = vector.broadcast %14 : vector<8x1xf32> to vector<8x32xf32>
      %25 = arith.subf %10, %24 : vector<8x32xf32>
      %cst_15 = arith.constant 9.99999974E-6 : f32
      %26 = vector.broadcast %cst_15 : f32 to vector<8x1xf32>
      %27 = arith.addf %23, %26 : vector<8x1xf32>
      %28 = math.rsqrt %27 : vector<8x1xf32>
      %29 = vector.broadcast %28 : vector<8x1xf32> to vector<8x32xf32>
      %30 = arith.mulf %25, %29 : vector<8x32xf32>
      %c0_16 = arith.constant 0 : index
      %c0_17 = arith.constant 0 : index
      %31 = vector.load %arg6[%c0_16, %c0_17] : memref<8x32xf32, #tpu.memory_space<vmem>>, vector<8x32xf32>
      tpu.vector_store %arg6[%c0_16, %c0_17], %30 {strides = array<i32>} : memref<8x32xf32, #tpu.memory_space<vmem>>, vector<8x32xf32>,
    } else {
    }
    %c0 = arith.constant 0 : index
    %c0_1 = arith.constant 0 : index
    %3 = vector.load %arg6[%c0, %c0_1] : memref<8x32xf32, #tpu.memory_space<vmem>>, vector<8x32xf32>
    %c0_2 = arith.constant 0 : index
    %c0_3 = arith.constant 0 : index
    %4 = vector.load %arg3[%c0_2, %c0_3] : memref<32x128xf32, #tpu.memory_space<vmem>>, vector<32x128xf32>
    %cst = arith.constant dense<0.000000e+00> : vector<8x128xf32>
    %5 = tpu.matmul %3, %4, %cst {dimension_numbers = #tpu.dot_dimension_numbers<[1], [0], [0], [1], [0, 0, 1, 1], [], []>} : vector<8x32xf32>, vector<32x128xf32>, vector<8x128xf32> -> vector<8x128xf32>
    %c0_4 = arith.constant 0 : index
    %c0_5 = arith.constant 0 : index
    %6 = vector.load %arg4[%c0_4, %c0_5] : memref<1x128xf32, #tpu.memory_space<vmem>>, vector<1x128xf32>
    %7 = vector.broadcast %6 : vector<1x128xf32> to vector<8x128xf32>
    %8 = arith.addf %5, %7 : vector<8x128xf32>
    %c0_6 = arith.constant 0 : index
    %c0_7 = arith.constant 0 : index
    %9 = vector.load %arg5[%c0_6, %c0_7] : memref<8x128xf32, #tpu.memory_space<vmem>>, vector<8x128xf32>
    tpu.vector_store %arg5[%c0_6, %c0_7], %8 {strides = array<i32>} : memref<8x128xf32, #tpu.memory_space<vmem>>, vector<8x128xf32>,
    return
  }
  func.func @transform_0(%arg0: i32, %arg1: i32) -> (i32, i32) {
    %c0_i32 = arith.constant 0 : i32
    %c0_i32_0 = arith.constant 0 : i32
    return %arg0, %c0_i32 : i32, i32
  }
  func.func @transform_1(%arg0: i32, %arg1: i32) -> (i32, i32) {
    %c0_i32 = arith.constant 0 : i32
    %c0_i32_0 = arith.constant 0 : i32
    return %c0_i32, %arg1 : i32, i32
  }
  func.func @transform_2(%arg0: i32, %arg1: i32) -> (i32, i32) {
    %c0_i32 = arith.constant 0 : i32
    %c0_i32_0 = arith.constant 0 : i32
    return %c0_i32, %arg1 : i32, i32
  }
  func.func @transform_3(%arg0: i32, %arg1: i32) -> (i32, i32) {
    %c0_i32 = arith.constant 0 : i32
    return %arg0, %arg1 : i32, i32
  }
}

module attributes {stable_mosaic.version = 11 : i64} {
  func.func @decoder_kernel(%arg0: i32, %arg1: i32, %arg2: memref<8x32xf32, #tpu.memory_space<vmem>>, %arg3: memref<32x128xf32, #tpu.memory_space<vmem>>, %arg4: memref<1x128xf32, #tpu.memory_space<vmem>>, %arg5: memref<8x128xf32, #tpu.memory_space<vmem>>, %arg6: memref<8x32xf32, #tpu.memory_space<vmem>>) attributes {dimension_semantics = [#tpu.dimension_semantics<parallel>, #tpu.dimension_semantics<arbitrary>], iteration_bounds = array<i64: 2, 1>, scalar_prefetch = 0 : i64, scratch_operands = 1 : i64, tpu.core_type = #tpu.core_type<tc>, window_params = [{transform_indices = @transform_0, window_bounds = array<i64: 8, 32>}, {transform_indices = @transform_1, window_bounds = array<i64: 32, 128>}, {transform_indices = @transform_2, window_bounds = array<i64: 1, 128>}, {transform_indices = @transform_3, window_bounds = array<i64: 8, 128>}]} {
    %c0_i32 = arith.constant 0 : i32
    %0 = arith.cmpi eq, %arg1, %c0_i32 : i32
    %1 = arith.extui %0 : i1 to i32
    %c0_i32_0 = arith.constant 0 : i32
    %2 = arith.cmpi ne, %1, %c0_i32_0 : i32
    scf.if %2 {
      %c0_8 = arith.constant 0 : index
      %c0_9 = arith.constant 0 : index
      %10 = vector.load %arg2[%c0_8, %c0_9] : memref<8x32xf32, #tpu.memory_space<vmem>>, vector<8x32xf32>
      %cst_10 = arith.constant dense<0.000000e+00> : vector<8xf32>
      %11 = vector.multi_reduction <add>, %10, %cst_10 [1] : vector<8x32xf32> to vector<8xf32>
      %12 = vector.shape_cast %11 : vector<8xf32> to vector<8x1xf32>
      %cst_11 = arith.constant 3.200000e+01 : f32
      %13 = vector.broadcast %cst_11 : f32 to vector<8x1xf32>
      %14 = arith.divf %12, %13 : vector<8x1xf32>
      %15 = arith.mulf %10, %10 : vector<8x32xf32>
      %cst_12 = arith.constant dense<0.000000e+00> : vector<8xf32>
      %16 = vector.multi_reduction <add>, %15, %cst_12 [1] : vector<8x32xf32> to vector<8xf32>
      %17 = vector.shape_cast %16 : vector<8xf32> to vector<8x1xf32>
      %cst_13 = arith.constant 3.200000e+01 : f32
      %18 = vector.broadcast %cst_13 : f32 to vector<8x1xf32>
      %19 = arith.divf %17, %18 : vector<8x1xf32>
      %20 = arith.mulf %14, %14 : vector<8x1xf32>
      %21 = arith.subf %19, %20 : vector<8x1xf32>
      %cst_14 = arith.constant 0.000000e+00 : f32
      %22 = vector.broadcast %cst_14 : f32 to vector<8x1xf32>
      %23 = arith.maximumf %21, %22 : vector<8x1xf32>
      %24 = vector.broadcast %14 : vector<8x1xf32> to vector<8x32xf32>
      %25 = arith.subf %10, %24 : vector<8x32xf32>
      %cst_15 = arith.constant 9.99999974E-6 : f32
      %26 = vector.broadcast %cst_15 : f32 to vector<8x1xf32>
      %27 = arith.addf %23, %26 : vector<8x1xf32>
      %28 = math.rsqrt %27 : vector<8x1xf32>
      %29 = vector.broadcast %28 : vector<8x1xf32> to vector<8x32xf32>
      %30 = arith.mulf %25, %29 : vector<8x32xf32>
      %c0_16 = arith.constant 0 : index
      %c0_17 = arith.constant 0 : index
      %31 = vector.load %arg6[%c0_16, %c0_17] : memref<8x32xf32, #tpu.memory_space<vmem>>, vector<8x32xf32>
      tpu.vector_store %arg6[%c0_16, %c0_17], %30 {strides = array<i32>} : memref<8x32xf32, #tpu.memory_space<vmem>>, vector<8x32xf32>,
    } else {
    }
    %c0 = arith.constant 0 : index
    %c0_1 = arith.constant 0 : index
    %3 = vector.load %arg6[%c0, %c0_1] : memref<8x32xf32, #tpu.memory_space<vmem>>, vector<8x32xf32>
    %c0_2 = arith.constant 0 : index
    %c0_3 = arith.constant 0 : index
    %4 = vector.load %arg3[%c0_2, %c0_3] : memref<32x128xf32, #tpu.memory_space<vmem>>, vector<32x128xf32>
    %cst = arith.constant dense<0.000000e+00> : vector<8x128xf32>
    %5 = tpu.matmul %3, %4, %cst {dimension_numbers = #tpu.dot_dimension_numbers<[1], [0], [0], [1], [0, 0, 1, 1], [], []>} : vector<8x32xf32>, vector<32x128xf32>, vector<8x128xf32> -> vector<8x128xf32>
    %c0_4 = arith.constant 0 : index
    %c0_5 = arith.constant 0 : index
    %6 = vector.load %arg4[%c0_4, %c0_5] : memref<1x128xf32, #tpu.memory_space<vmem>>, vector<1x128xf32>
    %7 = vector.broadcast %6 : vector<1x128xf32> to vector<8x128xf32>
    %8 = arith.addf %5, %7 : vector<8x128xf32>
    %c0_6 = arith.constant 0 : index
    %c0_7 = arith.constant 0 : index
    %9 = vector.load %arg5[%c0_6, %c0_7] : memref<8x128xf32, #tpu.memory_space<vmem>>, vector<8x128xf32>
    tpu.vector_store %arg5[%c0_6, %c0_7], %8 {strides = array<i32>} : memref<8x128xf32, #tpu.memory_space<vmem>>, vector<8x128xf32>,
    return
  }
  func.func @transform_0(%arg0: i32, %arg1: i32) -> (i32, i32) {
    %c0_i32 = arith.constant 0 : i32
    %c0_i32_0 = arith.constant 0 : i32
    return %arg0, %c0_i32 : i32, i32
  }
  func.func @transform_1(%arg0: i32, %arg1: i32) -> (i32, i32) {
    %c0_i32 = arith.constant 0 : i32
    %c0_i32_0 = arith.constant 0 : i32
    return %c0_i32, %arg1 : i32, i32
  }
  func.func @transform_2(%arg0: i32, %arg1: i32) -> (i32, i32) {
    %c0_i32 = arith.constant 0 : i32
    %c0_i32_0 = arith.constant 0 : i32
    return %c0_i32, %arg1 : i32, i32
  }
  func.func @transform_3(%arg0: i32, %arg1: i32) -> (i32, i32) {
    %c0_i32 = arith.constant 0 : i32
    return %arg0, %arg1 : i32, i32
  }
}

</mosaic_0001>

<bundles_post_ra>
// kernel: tpu_custom_call.1
= control target key start
LH: loop header
LB: loop body
LE: loop exit
PB: predicated region body
PF: predicated region fallthrough
CT: control target
= control target key end

     0   :  { %8 = vsyncpa [#allocation4], 0  ;;  %s984_s0 = inlined_call_operand.hbm [shape: f32[16,32], index: 0, kind: input, shape index: {}]   ;;  %s985_s1 = inlined_call_operand.hbm [shape: f32[32,128], index: 1, kind: input, shape index: {}]   ;;  %s986_s2 = inlined_call_operand.vmem [shape: f32[1,128], index: 2, kind: input, shape index: {}]   ;;  %s987_s3 = inlined_call_operand.hbm [shape: f32[16,128], index: 3, kind: output, shape index: {}]  }
   0x1   :  { %10 = vsyncpa [#allocation4 + $0x1], 0 }
   0x2   :  { %11 = vsyncpa [#allocation7], 0 }
   0x3   :  { %12 = vsyncpa [#allocation5], 0 }
   0x4   :  { %14 = vsyncpa [#allocation5 + $0x1], 0  ;;  %s759_s12 = smov 0   ;;  %s761_s13 = smov 0  }
   0x5   :  { %s763_s14 = smov 0   ;;  %s765_s15 = smov 0  }
   0x6   :  { %s767_s16 = smov 0   ;;  %s769_s17 = smov 0  }
   0x7 LB: > { %s465_s18 = sadd.s32 4294967295, %s729_s17   ;;  %s466_s19 = sadd.s32 4294967294, %s729_s17   ;;  %s729_s17 = sphi %s769_s17, %s20_s17   ;;  %s725_s16 = sphi %s767_s16, %s1011_s16   ;;  %s721_s15 = sphi %s765_s15, %s1010_s15   ;;  %s717_s14 = sphi %s763_s14, %s1009_s14   ;;  %s713_s13 = sphi %s761_s13, %s1008_s13   ;;  %s709_s12 = sphi %s759_s12, %s1007_s12  }
   0x8   : > { %p52_p0 = scmp.ne.s32.totalorder %s713_s13, %s709_s12  ;;  %p793_p1 = scmp.eq.s32.totalorder %s465_s18, 0 }
   0x9   : > { %p797_p2 = scmp.eq.s32.totalorder %s465_s18, 1  ;;  %p136_p3 = scmp.eq.s32.totalorder %s466_s19, 1 }
   0xa   : > { %s992_s20 = scalar_select %p793_p1, 1, 0 }
   0xb   : > { %s993_s21 = scalar_select %p797_p2, 1, 0 }
   0xc   : > { %p803_p4 = por %p793_p1, %p52_p0  ;;  %p467_p5 = scmp.ge.s32.totalorder %s729_s17, 1 }
   0xd   : > { %p808_p6 = por %p136_p3, %p52_p0  ;;  %p143_p7 = scmp.lt.s32.totalorder %s729_s17, 3 }
   0xe   : > { %s994_s22 = scalar_select %p803_p4, 1, 0 }
   0xf   : > { %s995_s23 = scalar_select %p808_p6, 1, 0 }
  0x10   : > { %p813_p8 = pnand %p467_p5, %p143_p7  ;;  %s731_s25 = smov [#allocation6]  }
  0x11   : > { %s157_s26 = sshll.u32 %s731_s25, 4  ;;  %s32_s28 = sadd.s32 1, %s725_s16  ;;  %s158_s26 = int_to_ptr.vmem [resolvable:$true] %s157_s26 }
  0x12   : > { %s996_s24 = scalar_select %p813_p8, 1, 0 }
  0x13   : > { %p513_p9 = pneg %p813_p8  ;;  %s585_s4 = scalar_lea.hbm %s985_s1, 512 }
  0x14   : > { %p586_p12 = scmp.ne.s32.totalorder %s985_s1, %s585_s4  ;;  %p592_p5 = scmp.lt.u32.totalorder %s585_s4, %s985_s1 }
  0x15   : > { %p822_p11 = pnand %p513_p9, %p793_p1 }
  0x17   : > { %p587_p13 = pneg %p822_p11 }
  0x19   : > { %p588_p0 = pnand %p587_p13, %p586_p12 }
  0x1b   : > { %p589_p3 = pneg %p588_p0 }
  0x1d   : > { %p594_p7 = pnand %p592_p5, %p589_p3 }
  0x1f   : > { %597 = shalt.err (!%p594_p7)
}
  0x20   : > { %s598_s9 = scalar_lea.vmem %s158_s26, 512  ;;  %p606_p1 = scmp.lt.s32.totalorder %s158_s26, %s158_s26 }
  0x21   : > { %p599_p9 = scmp.ne.s32.totalorder %s158_s26, %s598_s9  ;;  %p607_p4 = scmp.lt.s32.totalorder %s598_s9, %s598_s9 }
  0x23   : > { %p601_p10 = pnand %p599_p9, %p587_p13  ;;  %p608_p8 = por %p607_p4, %p606_p1 }
  0x25   : > { %p602_p6 = pneg %p601_p10 }
  0x27   : > { %p609_p2 = pnand %p608_p8, %p602_p6 }
  0x29   : > { %612 = shalt.err (!%p609_p2)
}
  0x2a   : > { %s732_s10 = smov 128   ;;  %s733_s11 = smov 8  }
  0x2b   : > { %516 = dma.hbm_to_vmem [thread:$0]  (!%p822_p11), %s985_s1, 512, %s158_s26, [#allocation7], %s732_s10, %s732_s10, %s733_s11  }
  0x2c   : > { %p34_p1 = scmp.ge.s32.totalorder %s32_s28, 2  ;;  %s39_s25 = sadd.s32 1, %s717_s14 }
  0x2d   : > { %p46_p2 = scmp.ne.s32.totalorder %s717_s14, %s713_s13  ;;  %p47_p4 = scmp.eq.s32.totalorder %s729_s17, 0 }
  0x2e   : > { %s1013_s28 = smov (%p34_p1, %s32_s28), 0  ;;  %p999_p8 = scmp.ne.s32.totalorder %s993_s21, 0 }
  0x2f   : > { %p849_p6 = por %p47_p4, %p46_p2  ;;  %s36_s27 = ssub.s32 %s725_s16, %s1013_s28 }
  0x30   : > { %p855_p10 = por %p999_p8, %p46_p2  ;;  %p526_p12 = scmp.lt.s32.totalorder %s729_s17, 2 }
  0x31   : > { %p37_p11 = scmp.eq.s32.totalorder %s36_s27, 0  ;;  %s177_s26 = sand.u32 1, %s717_s14  }
  0x32   : > { %s471_s4 = sshll.u32 %s177_s26, 3  ;;  %s472_s6 = sshll.u32 %s725_s16, 7 }
  0x33   : > { %s864_s5 = scalar_select %p37_p11, %s717_s14, %s39_s25  }
  0x34   : > { %s870_s9 = scalar_lea.hbm %s984_s0, %s472_s6  ;;  %s181_s21 = scalar_lea.vmem [#allocation3], %s471_s4 }
  0x35   : > { %s188_s10 = sshll.u32 %s181_s21, 4  ;;  %p876_p13 = pnand %p526_p12, %p849_p6  ;;  %s872_s10 = int_to_ptr.vmem [resolvable:$true] %s188_s10 }
  0x36   : > { %s178_s18 = scalar_lea.sflag [#allocation4], %s177_s26  ;;  %s613_s19 = scalar_lea.hbm %s870_s9, 128 }
  0x37   : > { %p614_p0 = scmp.ne.s32.totalorder %s870_s9, %s613_s19  ;;  %p615_p3 = pneg %p876_p13 }
  0x38   : > { %s618_s4 = scalar_lea.hbm %s984_s0, 256  ;;  %p619_p9 = scmp.lt.u32.totalorder %s870_s9, %s984_s0 }
  0x39   : > { %p616_p5 = pnand %p615_p3, %p614_p0  ;;  %p620_p1 = scmp.lt.u32.totalorder %s618_s4, %s613_s19 }
  0x3a   : > { %p622_p4 = scmp.lt.u32.totalorder %s613_s19, %s870_s9 }
  0x3b   : > { %p617_p7 = pneg %p616_p5  ;;  %p621_p2 = por %p620_p1, %p619_p9 }
  0x3d   : > { %p623_p6 = por %p622_p4, %p621_p2 }
  0x3f   : > { %p624_p8 = pnand %p623_p6, %p617_p7 }
  0x41   : > { %627 = shalt.err (!%p624_p8)
}
  0x42   : > { %s628_s26 = scalar_lea.vmem %s872_s10, 128  ;;  %s734_s7 = smov [#allocation3]  }
  0x43   : > { %p629_p12 = scmp.ne.s32.totalorder %s872_s10, %s628_s26  ;;  %s633_s8 = sshll.u32 %s734_s7, 4  ;;  %s634_s8 = int_to_ptr.vmem [resolvable:$false] %s633_s8 }
  0x44   : > { %s635_s21 = scalar_lea.vmem %s634_s8, 256  ;;  %p636_p5 = scmp.lt.s32.totalorder %s872_s10, %s634_s8 }
  0x45   : > { %p631_p11 = pnand %p629_p12, %p615_p3  ;;  %p637_p9 = scmp.lt.s32.totalorder %s635_s21, %s628_s26 }
  0x47   : > { %p632_p0 = pneg %p631_p11  ;;  %p638_p1 = por %p637_p9, %p636_p5 }
  0x49   : > { %p639_p2 = pnand %p638_p1, %p632_p0 }
  0x4b   : > { %642 = shalt.err (!%p639_p2)
}
  0x4c   : > { %520 = dma.hbm_to_vmem [thread:$0]  (!%p876_p13), %s870_s9, 128, %s872_s10, %s178_s18  }
  0x4d   : > { %p1002_p7 = scmp.ne.s32.totalorder %s996_s24, 0 }
  0x4e   : > { %s908_s19 = sand.u32 (!%p1002_p7), 1, %s713_s13   ;;  %p1003_p3 = scmp.ne.s32.totalorder (!%p1002_p7), %s994_s22, 0 }
  0x4f   : > { %197 = sbr.rel (%p1002_p7) target bundleno = 495 (0x1ef), region = 32  ;;  %s474_s25 = sshll.u32 (!%p1002_p7), %s908_s19, 3 }
  0x50   : > { %s200_s27 = scalar_lea.sflag (!%p1002_p7), [#allocation4], %s908_s19  ;;  %s203_s4 = scalar_lea.vmem (!%p1002_p7), [#allocation3], %s474_s25 }
  0x56   : > { %696 = dma.done.wait (%p1003_p3), %s200_s27, 128  }
  0x57   : > { %698 = vsyncadd (%p1003_p3), %s200_s27, 4294967168  ;;  %p1004_p13 = scmp.ne.s32.totalorder %s992_s20, 0 }
  0x59   : > { %700 = dma.done.wait (%p1004_p13), [#allocation7], 512  }
  0x5a   : > { %702 = vsyncadd (%p1004_p13), [#allocation7], 4294966784  ;;  %vm241_vm0 = vcmask 261120   ;;  %v240_v0 = vld [vmem:[%s203_s4] sm:$0xff]  ;;  %v261_v4 = vld [vmem:[#allocation6] sm:$0xff]  ;;  %v735_v7 = vmov 0.0|0.0  }
  0x5b   : > { %v242_v1 = vsel %vm241_vm0, %v240_v0, 0.0  ;;  %v247_v2 = vmul.f32 %v240_v0, %v240_v0  ;;  %v262_v5 = vld [vmem:[#allocation6 + $0x8] sm:$0xff]  ;;  %499 = vmatprep.subr.bf16.mxu0 %v735_v7  ;;  %v263_v8 = vld [vmem:[#allocation6 + $0x10] sm:$0xff]  ;;  %v264_v9 = vld [vmem:[#allocation6 + $0x18] sm:$0xff]  ;;  %vm736_vm1 = vmmov 0   ;;  %v737_v11 = vmov 0.0  }
  0x5c   : > { %243 = vadd.xlane.f32.xlu0 %v242_v1  ;;  %v500_v6 = vpack.c.bf16 %v262_v5, %v261_v4  ;;  %v503_v10 = vpack.c.bf16 %v264_v9, %v263_v8  ;;  %496 = vmatprep.mubr.msk.f32.mxu0 %vm736_vm1, %v737_v11  ;;  %v477_v24 = vld [vmem:[%s986_s2] ss:$0 sm:$0xff]  ;;  %s480_s24 = sshll.u32 %s721_s15, 7  ;;  %s232_s9 = scalar_lea.vmem [#allocation8], %s474_s25 }
  0x5d   : > { %v248_v3 = vsel %vm241_vm0, %v247_v2, 0.0  ;;  %s362_s10 = sshll.u32 %s232_s9, 4  ;;  %s935_s29 = scalar_lea.hbm %s987_s3, %s480_s24  ;;  %s937_s10 = int_to_ptr.vmem [resolvable:$true] %s362_s10 }
  0x5e   : > { %501 = vmatpush3.bf16.msra.mxu0 %v500_v6  ;;  %s348_s6 = scalar_lea.sflag [#allocation5], %s908_s19  ;;  %s643_s26 = scalar_lea.vmem %s937_s10, 128 }
  0x5f   : > { %502 = vmatprep.subr.bf16.mxu0 %v735_v7  ;;  %p644_p4 = scmp.ne.s32.totalorder %s937_s10, %s643_s26  ;;  %s738_s15 = smov [#allocation8]  }
  0x60   : > { %249 = vadd.xlane.f32.xlu0 %v248_v3  ;;  %s647_s7 = sshll.u32 %s738_s15, 4  ;;  %s648_s7 = int_to_ptr.vmem [resolvable:$false] %s647_s7 }
  0x61   : > { %p645_p6 = pnand %p644_p4, %p855_p10  ;;  %s649_s8 = scalar_lea.vmem %s648_s7, 256 }
  0x62   : > { %504 = vmatpush3.bf16.msra.mxu0 %v503_v10  ;;  %p650_p12 = scmp.lt.s32.totalorder %s937_s10, %s648_s7  ;;  %p651_p11 = scmp.lt.s32.totalorder %s649_s8, %s643_s26 }
  0x63   : > { %p646_p8 = pneg %p645_p6 }
  0x64   : > { %p652_p0 = por %p651_p11, %p650_p12 }
  0x66   : > { %p653_p5 = pnand %p652_p0, %p646_p8 }
  0xe9   : > { %v244_v12 = vpop.xlane.xlu0 %243 }
  0xea   : > { %v246_v13 = vmul.f32 0.03125, %v244_v12 }
  0xec   : > { %v252_v15 = vmul.f32 %v246_v13, %v246_v13  ;;  %v255_v20 = vsub.f32 %v240_v0, %v246_v13 }
  0xed   : > { %v250_v14 = vpop.xlane.xlu0 %249 }
  0xee   : > { %v251_v16 = vmul.f32 0.03125, %v250_v14 }
  0xf0   : > { %v253_v17 = vsub.f32 %v251_v16, %v252_v15 }
  0xf2   : > { %v254_v18 = vmax.f32 %v253_v17, 0.0 }
  0xf4   : > { %v256_v19 = vadd.f32 1e-05, %v254_v18 }
  0xf6   : > { %583 = vrsqrt.f32 %v256_v19 }
 0x100   : > { %v584_v21 = vpop.eup %583 }
 0x101   : > { %v258_v22 = vmul.f32 %v584_v21, %v255_v20 }
 0x103   : > { %259 = vst.msk [vmem:[#allocation2] sm:$0xff] %vm241_vm0, %v258_v22 }
 0x10a   : > { %v260_v23 = vld [vmem:[#allocation2] sm:$0xff] }
 0x10b   : > { %497 = vmatmul.mubr.msk.f32.vlgmr.msra.gmra.mrb[0].mxu0 %vm241_vm0, %v260_v23 }
 0x1de   : > { %v342_v25 = vpop.f32.mrb[0].mxu0 }
 0x1df   : > { %v343_v26 = vadd.f32 %v477_v24, %v342_v25  ;;  %v498_v27 = vpop.f32.mrb[1].mxu0 }
 0x1e1   : > { %346 = vst [vmem:[%s232_s9] sm:$0xff] %v343_v26 }
 0x1e2   : > { %656 = shalt.err (!%p653_p5)
}
 0x1e3   : > { %s657_s21 = scalar_lea.hbm %s935_s29, 128  ;;  %s661_s27 = scalar_lea.hbm %s987_s3, 256 }
 0x1e4   : > { %p658_p9 = scmp.ne.s32.totalorder %s935_s29, %s657_s21  ;;  %p662_p7 = scmp.lt.u32.totalorder %s935_s29, %s987_s3 }
 0x1e5   : > { %p663_p3 = scmp.lt.u32.totalorder %s661_s27, %s657_s21  ;;  %p665_p4 = scmp.lt.u32.totalorder %s657_s21, %s935_s29 }
 0x1e6   : > { %p659_p1 = pnand %p658_p9, %p855_p10 }
 0x1e7   : > { %p664_p13 = por %p663_p3, %p662_p7 }
 0x1e8   : > { %p660_p2 = pneg %p659_p1 }
 0x1e9   : > { %p666_p6 = por %p665_p4, %p664_p13 }
 0x1eb   : > { %p667_p8 = pnand %p666_p6, %p660_p2 }
 0x1ed   : > { %670 = shalt.err (!%p667_p8)
}
 0x1ee   : > { %511 = dma.vmem_to_hbm [thread:$0]  (%p855_p10), %s937_s10, 128, %s935_s29, %s348_s6  }
 0x1ef PF: > { %s374_s22 = sand.u32 1, %s709_s12   ;;  %p1005_p12 = scmp.ne.s32.totalorder %s995_s23, 0 }
 0x1f0   : > { %p1006_p11 = scmp.ge.s32.totalorder %s729_s17, 2  ;;  %s375_s24 = scalar_lea.sflag [#allocation5], %s374_s22 }
 0x1f2   : > { %p522_p0 = pnand %p1006_p11, %p1005_p12 }
 0x1f4   : > { %704 = dma.done.wait (!%p522_p0), %s375_s24, 128  }
 0x1f5   : > { %706 = vsyncadd (!%p522_p0), %s375_s24, 4294967168  ;;  %s20_s17 = sadd.s32 1, %s729_s17   ;;  %s1007_s12 = smov %s713_s13 }
 0x1f6   : > { %p17_p5 = scmp.ge.s32.totalorder %s20_s17, 4   ;;  %s1008_s13 = smov %s717_s14 }
 0x1f7   : > { %s1009_s14 = smov %s864_s5  ;;  %s1010_s15 = smov %s725_s16 }
 0x1f8   : > { %s1011_s16 = smov %s1013_s28  ;;  %19 = sbr.rel (!%p17_p5) target bundleno = 7 (0x7), region = 89 }
 0x1ff   :  { %380 = vsyncpa [#allocation4], 1 }
 0x200   :  { %382 = vsyncpa [#allocation4 + $0x1], 1 }
 0x201   :  { %383 = vsyncpa [#allocation7], 1 }
 0x202   :  { %384 = vsyncpa [#allocation5], 1 }
 0x203   :  { %386 = vsyncpa [#allocation5 + $0x1], 1 }

// kernel: tpu_custom_call.1
= control target key start
LH: loop header
LB: loop body
LE: loop exit
PB: predicated region body
PF: predicated region fallthrough
CT: control target
= control target key end

     0   :  { %8 = vsyncpa [#allocation4], 0  ;;  %s984_s0 = inlined_call_operand.hbm [shape: f32[16,32], index: 0, kind: input, shape index: {}]   ;;  %s985_s1 = inlined_call_operand.hbm [shape: f32[32,128], index: 1, kind: input, shape index: {}]   ;;  %s986_s2 = inlined_call_operand.vmem [shape: f32[1,128], index: 2, kind: input, shape index: {}]   ;;  %s987_s3 = inlined_call_operand.hbm [shape: f32[16,128], index: 3, kind: output, shape index: {}]  }
   0x1   :  { %10 = vsyncpa [#allocation4 + $0x1], 0 }
   0x2   :  { %11 = vsyncpa [#allocation7], 0 }
   0x3   :  { %12 = vsyncpa [#allocation5], 0 }
   0x4   :  { %14 = vsyncpa [#allocation5 + $0x1], 0  ;;  %s759_s12 = smov 0   ;;  %s761_s13 = smov 0  }
   0x5   :  { %s763_s14 = smov 0   ;;  %s765_s15 = smov 0  }
   0x6   :  { %s767_s16 = smov 0   ;;  %s769_s17 = smov 0  }
   0x7 LB: > { %s465_s18 = sadd.s32 4294967295, %s729_s17   ;;  %s466_s19 = sadd.s32 4294967294, %s729_s17   ;;  %s729_s17 = sphi %s769_s17, %s20_s17   ;;  %s725_s16 = sphi %s767_s16, %s1011_s16   ;;  %s721_s15 = sphi %s765_s15, %s1010_s15   ;;  %s717_s14 = sphi %s763_s14, %s1009_s14   ;;  %s713_s13 = sphi %s761_s13, %s1008_s13   ;;  %s709_s12 = sphi %s759_s12, %s1007_s12  }
   0x8   : > { %p52_p0 = scmp.ne.s32.totalorder %s713_s13, %s709_s12  ;;  %p793_p1 = scmp.eq.s32.totalorder %s465_s18, 0 }
   0x9   : > { %p797_p2 = scmp.eq.s32.totalorder %s465_s18, 1  ;;  %p136_p3 = scmp.eq.s32.totalorder %s466_s19, 1 }
   0xa   : > { %s992_s20 = scalar_select %p793_p1, 1, 0 }
   0xb   : > { %s993_s21 = scalar_select %p797_p2, 1, 0 }
   0xc   : > { %p803_p4 = por %p793_p1, %p52_p0  ;;  %p467_p5 = scmp.ge.s32.totalorder %s729_s17, 1 }
   0xd   : > { %p808_p6 = por %p136_p3, %p52_p0  ;;  %p143_p7 = scmp.lt.s32.totalorder %s729_s17, 3 }
   0xe   : > { %s994_s22 = scalar_select %p803_p4, 1, 0 }
   0xf   : > { %s995_s23 = scalar_select %p808_p6, 1, 0 }
  0x10   : > { %p813_p8 = pnand %p467_p5, %p143_p7  ;;  %s731_s25 = smov [#allocation6]  }
  0x11   : > { %s157_s26 = sshll.u32 %s731_s25, 4  ;;  %s32_s28 = sadd.s32 1, %s725_s16  ;;  %s158_s26 = int_to_ptr.vmem [resolvable:$true] %s157_s26 }
  0x12   : > { %s996_s24 = scalar_select %p813_p8, 1, 0 }
  0x13   : > { %p513_p9 = pneg %p813_p8  ;;  %s585_s4 = scalar_lea.hbm %s985_s1, 512 }
  0x14   : > { %p586_p12 = scmp.ne.s32.totalorder %s985_s1, %s585_s4  ;;  %p592_p5 = scmp.lt.u32.totalorder %s585_s4, %s985_s1 }
  0x15   : > { %p822_p11 = pnand %p513_p9, %p793_p1 }
  0x17   : > { %p587_p13 = pneg %p822_p11 }
  0x19   : > { %p588_p0 = pnand %p587_p13, %p586_p12 }
  0x1b   : > { %p589_p3 = pneg %p588_p0 }
  0x1d   : > { %p594_p7 = pnand %p592_p5, %p589_p3 }
  0x1f   : > { %597 = shalt.err (!%p594_p7)
}
  0x20   : > { %s598_s9 = scalar_lea.vmem %s158_s26, 512  ;;  %p606_p1 = scmp.lt.s32.totalorder %s158_s26, %s158_s26 }
  0x21   : > { %p599_p9 = scmp.ne.s32.totalorder %s158_s26, %s598_s9  ;;  %p607_p4 = scmp.lt.s32.totalorder %s598_s9, %s598_s9 }
  0x23   : > { %p601_p10 = pnand %p599_p9, %p587_p13  ;;  %p608_p8 = por %p607_p4, %p606_p1 }
  0x25   : > { %p602_p6 = pneg %p601_p10 }
  0x27   : > { %p609_p2 = pnand %p608_p8, %p602_p6 }
  0x29   : > { %612 = shalt.err (!%p609_p2)
}
  0x2a   : > { %s732_s10 = smov 128   ;;  %s733_s11 = smov 8  }
  0x2b   : > { %516 = dma.hbm_to_vmem [thread:$0]  (!%p822_p11), %s985_s1, 512, %s158_s26, [#allocation7], %s732_s10, %s732_s10, %s733_s11  }
  0x2c   : > { %p34_p1 = scmp.ge.s32.totalorder %s32_s28, 2  ;;  %s39_s25 = sadd.s32 1, %s717_s14 }
  0x2d   : > { %p46_p2 = scmp.ne.s32.totalorder %s717_s14, %s713_s13  ;;  %p47_p4 = scmp.eq.s32.totalorder %s729_s17, 0 }
  0x2e   : > { %s1013_s28 = smov (%p34_p1, %s32_s28), 0  ;;  %p999_p8 = scmp.ne.s32.totalorder %s993_s21, 0 }
  0x2f   : > { %p849_p6 = por %p47_p4, %p46_p2  ;;  %s36_s27 = ssub.s32 %s725_s16, %s1013_s28 }
  0x30   : > { %p855_p10 = por %p999_p8, %p46_p2  ;;  %p526_p12 = scmp.lt.s32.totalorder %s729_s17, 2 }
  0x31   : > { %p37_p11 = scmp.eq.s32.totalorder %s36_s27, 0  ;;  %s177_s26 = sand.u32 1, %s717_s14  }
  0x32   : > { %s471_s4 = sshll.u32 %s177_s26, 3  ;;  %s472_s6 = sshll.u32 %s725_s16, 7 }
  0x33   : > { %s864_s5 = scalar_select %p37_p11, %s717_s14, %s39_s25  }
  0x34   : > { %s870_s9 = scalar_lea.hbm %s984_s0, %s472_s6  ;;  %s181_s21 = scalar_lea.vmem [#allocation3], %s471_s4 }
  0x35   : > { %s188_s10 = sshll.u32 %s181_s21, 4  ;;  %p876_p13 = pnand %p526_p12, %p849_p6  ;;  %s872_s10 = int_to_ptr.vmem [resolvable:$true] %s188_s10 }
  0x36   : > { %s178_s18 = scalar_lea.sflag [#allocation4], %s177_s26  ;;  %s613_s19 = scalar_lea.hbm %s870_s9, 128 }
  0x37   : > { %p614_p0 = scmp.ne.s32.totalorder %s870_s9, %s613_s19  ;;  %p615_p3 = pneg %p876_p13 }
  0x38   : > { %s618_s4 = scalar_lea.hbm %s984_s0, 256  ;;  %p619_p9 = scmp.lt.u32.totalorder %s870_s9, %s984_s0 }
  0x39   : > { %p616_p5 = pnand %p615_p3, %p614_p0  ;;  %p620_p1 = scmp.lt.u32.totalorder %s618_s4, %s613_s19 }
  0x3a   : > { %p622_p4 = scmp.lt.u32.totalorder %s613_s19, %s870_s9 }
  0x3b   : > { %p617_p7 = pneg %p616_p5  ;;  %p621_p2 = por %p620_p1, %p619_p9 }
  0x3d   : > { %p623_p6 = por %p622_p4, %p621_p2 }
  0x3f   : > { %p624_p8 = pnand %p623_p6, %p617_p7 }
  0x41   : > { %627 = shalt.err (!%p624_p8)
}
  0x42   : > { %s628_s26 = scalar_lea.vmem %s872_s10, 128  ;;  %s734_s7 = smov [#allocation3]  }
  0x43   : > { %p629_p12 = scmp.ne.s32.totalorder %s872_s10, %s628_s26  ;;  %s633_s8 = sshll.u32 %s734_s7, 4  ;;  %s634_s8 = int_to_ptr.vmem [resolvable:$false] %s633_s8 }
  0x44   : > { %s635_s21 = scalar_lea.vmem %s634_s8, 256  ;;  %p636_p5 = scmp.lt.s32.totalorder %s872_s10, %s634_s8 }
  0x45   : > { %p631_p11 = pnand %p629_p12, %p615_p3  ;;  %p637_p9 = scmp.lt.s32.totalorder %s635_s21, %s628_s26 }
  0x47   : > { %p632_p0 = pneg %p631_p11  ;;  %p638_p1 = por %p637_p9, %p636_p5 }
  0x49   : > { %p639_p2 = pnand %p638_p1, %p632_p0 }
  0x4b   : > { %642 = shalt.err (!%p639_p2)
}
  0x4c   : > { %520 = dma.hbm_to_vmem [thread:$0]  (!%p876_p13), %s870_s9, 128, %s872_s10, %s178_s18  }
  0x4d   : > { %p1002_p7 = scmp.ne.s32.totalorder %s996_s24, 0 }
  0x4e   : > { %s908_s19 = sand.u32 (!%p1002_p7), 1, %s713_s13   ;;  %p1003_p3 = scmp.ne.s32.totalorder (!%p1002_p7), %s994_s22, 0 }
  0x4f   : > { %197 = sbr.rel (%p1002_p7) target bundleno = 495 (0x1ef), region = 32  ;;  %s474_s25 = sshll.u32 (!%p1002_p7), %s908_s19, 3 }
  0x50   : > { %s200_s27 = scalar_lea.sflag (!%p1002_p7), [#allocation4], %s908_s19  ;;  %s203_s4 = scalar_lea.vmem (!%p1002_p7), [#allocation3], %s474_s25 }
  0x56   : > { %696 = dma.done.wait (%p1003_p3), %s200_s27, 128  }
  0x57   : > { %698 = vsyncadd (%p1003_p3), %s200_s27, 4294967168  ;;  %p1004_p13 = scmp.ne.s32.totalorder %s992_s20, 0 }
  0x59   : > { %700 = dma.done.wait (%p1004_p13), [#allocation7], 512  }
  0x5a   : > { %702 = vsyncadd (%p1004_p13), [#allocation7], 4294966784  ;;  %vm241_vm0 = vcmask 261120   ;;  %v240_v0 = vld [vmem:[%s203_s4] sm:$0xff]  ;;  %v261_v4 = vld [vmem:[#allocation6] sm:$0xff]  ;;  %v735_v7 = vmov 0.0|0.0  }
  0x5b   : > { %v242_v1 = vsel %vm241_vm0, %v240_v0, 0.0  ;;  %v247_v2 = vmul.f32 %v240_v0, %v240_v0  ;;  %v262_v5 = vld [vmem:[#allocation6 + $0x8] sm:$0xff]  ;;  %499 = vmatprep.subr.bf16.mxu0 %v735_v7  ;;  %v263_v8 = vld [vmem:[#allocation6 + $0x10] sm:$0xff]  ;;  %v264_v9 = vld [vmem:[#allocation6 + $0x18] sm:$0xff]  ;;  %vm736_vm1 = vmmov 0   ;;  %v737_v11 = vmov 0.0  }
  0x5c   : > { %243 = vadd.xlane.f32.xlu0 %v242_v1  ;;  %v500_v6 = vpack.c.bf16 %v262_v5, %v261_v4  ;;  %v503_v10 = vpack.c.bf16 %v264_v9, %v263_v8  ;;  %496 = vmatprep.mubr.msk.f32.mxu0 %vm736_vm1, %v737_v11  ;;  %v477_v24 = vld [vmem:[%s986_s2] ss:$0 sm:$0xff]  ;;  %s480_s24 = sshll.u32 %s721_s15, 7  ;;  %s232_s9 = scalar_lea.vmem [#allocation8], %s474_s25 }
  0x5d   : > { %v248_v3 = vsel %vm241_vm0, %v247_v2, 0.0  ;;  %s362_s10 = sshll.u32 %s232_s9, 4  ;;  %s935_s29 = scalar_lea.hbm %s987_s3, %s480_s24  ;;  %s937_s10 = int_to_ptr.vmem [resolvable:$true] %s362_s10 }
  0x5e   : > { %501 = vmatpush3.bf16.msra.mxu0 %v500_v6  ;;  %s348_s6 = scalar_lea.sflag [#allocation5], %s908_s19  ;;  %s643_s26 = scalar_lea.vmem %s937_s10, 128 }
  0x5f   : > { %502 = vmatprep.subr.bf16.mxu0 %v735_v7  ;;  %p644_p4 = scmp.ne.s32.totalorder %s937_s10, %s643_s26  ;;  %s738_s15 = smov [#allocation8]  }
  0x60   : > { %249 = vadd.xlane.f32.xlu0 %v248_v3  ;;  %s647_s7 = sshll.u32 %s738_s15, 4  ;;  %s648_s7 = int_to_ptr.vmem [resolvable:$false] %s647_s7 }
  0x61   : > { %p645_p6 = pnand %p644_p4, %p855_p10  ;;  %s649_s8 = scalar_lea.vmem %s648_s7, 256 }
  0x62   : > { %504 = vmatpush3.bf16.msra.mxu0 %v503_v10  ;;  %p650_p12 = scmp.lt.s32.totalorder %s937_s10, %s648_s7  ;;  %p651_p11 = scmp.lt.s32.totalorder %s649_s8, %s643_s26 }
  0x63   : > { %p646_p8 = pneg %p645_p6 }
  0x64   : > { %p652_p0 = por %p651_p11, %p650_p12 }
  0x66   : > { %p653_p5 = pnand %p652_p0, %p646_p8 }
  0xe9   : > { %v244_v12 = vpop.xlane.xlu0 %243 }
  0xea   : > { %v246_v13 = vmul.f32 0.03125, %v244_v12 }
  0xec   : > { %v252_v15 = vmul.f32 %v246_v13, %v246_v13  ;;  %v255_v20 = vsub.f32 %v240_v0, %v246_v13 }
  0xed   : > { %v250_v14 = vpop.xlane.xlu0 %249 }
  0xee   : > { %v251_v16 = vmul.f32 0.03125, %v250_v14 }
  0xf0   : > { %v253_v17 = vsub.f32 %v251_v16, %v252_v15 }
  0xf2   : > { %v254_v18 = vmax.f32 %v253_v17, 0.0 }
  0xf4   : > { %v256_v19 = vadd.f32 1e-05, %v254_v18 }
  0xf6   : > { %583 = vrsqrt.f32 %v256_v19 }
 0x100   : > { %v584_v21 = vpop.eup %583 }
 0x101   : > { %v258_v22 = vmul.f32 %v584_v21, %v255_v20 }
 0x103   : > { %259 = vst.msk [vmem:[#allocation2] sm:$0xff] %vm241_vm0, %v258_v22 }
 0x10a   : > { %v260_v23 = vld [vmem:[#allocation2] sm:$0xff] }
 0x10b   : > { %497 = vmatmul.mubr.msk.f32.vlgmr.msra.gmra.mrb[0].mxu0 %vm241_vm0, %v260_v23 }
 0x1de   : > { %v342_v25 = vpop.f32.mrb[0].mxu0 }
 0x1df   : > { %v343_v26 = vadd.f32 %v477_v24, %v342_v25  ;;  %v498_v27 = vpop.f32.mrb[1].mxu0 }
 0x1e1   : > { %346 = vst [vmem:[%s232_s9] sm:$0xff] %v343_v26 }
 0x1e2   : > { %656 = shalt.err (!%p653_p5)
}
 0x1e3   : > { %s657_s21 = scalar_lea.hbm %s935_s29, 128  ;;  %s661_s27 = scalar_lea.hbm %s987_s3, 256 }
 0x1e4   : > { %p658_p9 = scmp.ne.s32.totalorder %s935_s29, %s657_s21  ;;  %p662_p7 = scmp.lt.u32.totalorder %s935_s29, %s987_s3 }
 0x1e5   : > { %p663_p3 = scmp.lt.u32.totalorder %s661_s27, %s657_s21  ;;  %p665_p4 = scmp.lt.u32.totalorder %s657_s21, %s935_s29 }
 0x1e6   : > { %p659_p1 = pnand %p658_p9, %p855_p10 }
 0x1e7   : > { %p664_p13 = por %p663_p3, %p662_p7 }
 0x1e8   : > { %p660_p2 = pneg %p659_p1 }
 0x1e9   : > { %p666_p6 = por %p665_p4, %p664_p13 }
 0x1eb   : > { %p667_p8 = pnand %p666_p6, %p660_p2 }
 0x1ed   : > { %670 = shalt.err (!%p667_p8)
}
 0x1ee   : > { %511 = dma.vmem_to_hbm [thread:$0]  (%p855_p10), %s937_s10, 128, %s935_s29, %s348_s6  }
 0x1ef PF: > { %s374_s22 = sand.u32 1, %s709_s12   ;;  %p1005_p12 = scmp.ne.s32.totalorder %s995_s23, 0 }
 0x1f0   : > { %p1006_p11 = scmp.ge.s32.totalorder %s729_s17, 2  ;;  %s375_s24 = scalar_lea.sflag [#allocation5], %s374_s22 }
 0x1f2   : > { %p522_p0 = pnand %p1006_p11, %p1005_p12 }
 0x1f4   : > { %704 = dma.done.wait (!%p522_p0), %s375_s24, 128  }
 0x1f5   : > { %706 = vsyncadd (!%p522_p0), %s375_s24, 4294967168  ;;  %s20_s17 = sadd.s32 1, %s729_s17   ;;  %s1007_s12 = smov %s713_s13 }
 0x1f6   : > { %p17_p5 = scmp.ge.s32.totalorder %s20_s17, 4   ;;  %s1008_s13 = smov %s717_s14 }
 0x1f7   : > { %s1009_s14 = smov %s864_s5  ;;  %s1010_s15 = smov %s725_s16 }
 0x1f8   : > { %s1011_s16 = smov %s1013_s28  ;;  %19 = sbr.rel (!%p17_p5) target bundleno = 7 (0x7), region = 89 }
 0x1ff   :  { %380 = vsyncpa [#allocation4], 1 }
 0x200   :  { %382 = vsyncpa [#allocation4 + $0x1], 1 }
 0x201   :  { %383 = vsyncpa [#allocation7], 1 }
 0x202   :  { %384 = vsyncpa [#allocation5], 1 }
 0x203   :  { %386 = vsyncpa [#allocation5 + $0x1], 1 }

</bundles_post_ra>
